<compile_context>
chip_gen: v5e
topology: v5e:2x2
jax: 0.10.0
libtpu: 0.0.40
codegen_flags: <defaults>
</compile_context>

<pallas_src>
import functools

import numpy as np
import jax
import jax.numpy as jnp
from jax.experimental import pallas as pl
from jax.experimental.pallas import tpu as pltpu

EMBED_DIM = 30
DROPOUT_P = 0.2
# numpy scalar (literalable) -> never captured as a jax.Array constant.
_KEEP_THRESHOLD = np.uint32(int(DROPOUT_P * (1 << 32)))  # drop if bits < thr
_INV_KEEP = 1.0 / (1.0 - DROPOUT_P)


def _round_up(x: int, m: int) -> int:
    return ((x + m - 1) // m) * m


def _ffn_kernel(seed_ref, x_ref, w1_ref, b1_ref, w2_ref, b2_ref, o_ref, *,
                apply_dropout: bool, use_hw_prng: bool, block_rows: int):
    # x_ref:  (TM, E)            current row tile, VMEM (unpadded lanes)
    # w1_ref: (E, H_pad)   b1_ref: (1, H_pad)     (resident in VMEM)
    # w2_ref: (H_pad, E)   b2_ref: (1, E)         (resident in VMEM)
    x = x_ref[...]

    # Linear 1 + ReLU (MXU, f32 accumulate). K = E = 30; Mosaic pads the
    # contraction internally, no wasted lane padding in HBM.
    h = jnp.dot(x, w1_ref[...], preferred_element_type=jnp.float32) + b1_ref[...]
    h = jnp.maximum(h, 0.0)

    # Linear 2 (lane-dense K = H_pad = 128). w2/b2 already carry the 1/(1-p)
    # inverted-dropout scale when training, so dropout below is just a select.
    y = jnp.dot(h, w2_ref[...], preferred_element_type=jnp.float32) + b2_ref[...]

    if apply_dropout:
        if use_hw_prng:
            # Hardware PRNG: effectively free vs. the VALU-heavy software hash.
            pltpu.prng_seed(seed_ref[0] + pl.program_id(0))
            bits = pltpu.prng_random_bits(y.shape)
            if bits.dtype != jnp.uint32:
                bits = pltpu.bitcast(bits, jnp.uint32)
        else:
            # Portable counter-based hash fallback (interpret mode / non-TPU).
            # Constants are numpy scalars so nothing gets captured as a const.
            row0 = pl.program_id(0) * block_rows
            rows = (jax.lax.broadcasted_iota(jnp.int32, y.shape, 0)
                    + row0).astype(jnp.uint32)
            cols = jax.lax.broadcasted_iota(jnp.int32, y.shape, 1).astype(jnp.uint32)
            seed = seed_ref[0].astype(jnp.uint32)

            bits = rows * np.uint32(0x9E3779B1)
            bits = bits ^ (cols * np.uint32(0x85EBCA77))
            bits = bits ^ ((seed + np.uint32(1)) * np.uint32(0xC2B2AE3D))
            # murmur3 finalizer mix
            bits = bits ^ (bits >> np.uint32(16))
            bits = bits * np.uint32(0x85EBCA6B)
            bits = bits ^ (bits >> np.uint32(13))
            bits = bits * np.uint32(0xC2B2AE35)
            bits = bits ^ (bits >> np.uint32(16))

        keep = bits >= _KEEP_THRESHOLD            # P(keep) = 1 - p
        y = jnp.where(keep, y, 0.0)               # scale already folded in

    o_ref[...] = y.astype(o_ref.dtype)


def feed_forward(x, w1, b1, w2, b2, seed: int = 0, training: bool = True,
                 block_rows: int = 1024):
    """x: (B, T, E) float32.  Returns (B, T, E) float32.

    block_rows=1024 amortizes the ~0.35 us per-grid-step overhead while the
    double-buffered footprint (f32 x/out tiles at 30 lanes + resident padded
    weights + f32 intermediates) stays around ~1-2 MiB, far under the scoped
    VMEM default on every TPU generation.  An explicit vmem_limit_bytes is
    only passed when a much larger tile would exceed v5e's 16 MiB default.
    """
    B, T, E = x.shape
    H = w1.shape[1]
    M = B * T

    H_pad = _round_up(H, 128)  # lane-pad only the hidden dim (resident weights)

    # Row tile: as large as block_rows allows (multiple of 8 sublanes), but
    # keep >= 2 grid steps when possible so both v7x TensorCores get work.
    tm = min(block_rows, _round_up(M, 8))
    if M > 8 and _round_up(M, tm) // tm < 2:
        tm = _round_up((M + 1) // 2, 8)
    M_pad = _round_up(M, tm)

    # Activations stay unpadded in the lane dim; only pad rows if needed.
    x2d = x.reshape(M, E)
    if M_pad != M:
        x2d = jnp.pad(x2d, ((0, M_pad - M), (0, 0)))

    # Resident weights: H lane-padded to 128, E left untouched.  Fold the
    # inverted-dropout scale into the second layer when training.
    scale = _INV_KEEP if training else 1.0
    w1p = jnp.zeros((E, H_pad), w1.dtype).at[:, :H].set(w1)
    b1p = jnp.zeros((1, H_pad), b1.dtype).at[0, :H].set(b1)
    w2p = jnp.zeros((H_pad, E), w2.dtype).at[:H, :].set(w2 * scale)
    b2p = (b2 * scale).reshape(1, E)

    # Hardware PRNG only when actually running on a TPU backend; otherwise
    # (e.g. CPU interpret harness) use the portable hash fallback.
    use_hw_prng = bool(training) and jax.default_backend() == "tpu"

    grid = (M_pad // tm,)
    kernel = functools.partial(_ffn_kernel, apply_dropout=training,
                               use_hw_prng=use_hw_prng, block_rows=tm)

    # Real (unpadded) flops / bytes so XLA scheduling isn't fed inflated numbers.
    cost = pl.CostEstimate(
        flops=4 * M * E * H,                       # two GEMMs, 2*M*E*H each
        transcendentals=0,
        bytes_accessed=4 * (2 * M * E + E * H + H + H * E + E),
    )

    # Scoped-VMEM handling: only pass an explicit limit when the estimated
    # double-buffered footprint would exceed v5e's 16 MiB default.
    est_vmem = 4 * (2 * tm * E            # x double-buffer
                    + 2 * tm * E          # out double-buffer
                    + 2 * tm * H_pad      # h / y f32 intermediates
                    + E * H_pad + H_pad + H_pad * E + E)
    cp_kwargs = dict(dimension_semantics=("parallel",))
    if est_vmem > 12 * 1024 * 1024:
        cp_kwargs["vmem_limit_bytes"] = min(2 * est_vmem, 100 * 1024 * 1024)

    out2d = pl.pallas_call(
        kernel,
        out_shape=jax.ShapeDtypeStruct((M_pad, E), x.dtype),
        grid_spec=pltpu.PrefetchScalarGridSpec(
            num_scalar_prefetch=1,
            grid=grid,
            in_specs=[
                pl.BlockSpec((tm, E), lambda i, s: (i, 0)),      # x tile
                pl.BlockSpec((E, H_pad), lambda i, s: (0, 0)),   # w1 (resident)
                pl.BlockSpec((1, H_pad), lambda i, s: (0, 0)),   # b1
                pl.BlockSpec((H_pad, E), lambda i, s: (0, 0)),   # w2 (resident)
                pl.BlockSpec((1, E), lambda i, s: (0, 0)),       # b2
            ],
            out_specs=pl.BlockSpec((tm, E), lambda i, s: (i, 0)),
        ),
        compiler_params=pltpu.CompilerParams(**cp_kwargs),
        cost_estimate=cost,
    )(jnp.asarray([seed], dtype=jnp.int32), x2d, w1p, b1p, w2p, b2p)

    out2d = out2d if M_pad == M else out2d[:M]
    return out2d.reshape(B, T, E)


def init_params(key, embed_dim):
    """Deterministic init matching nn.Linear's U(-1/sqrt(fan_in), 1/sqrt(fan_in))."""
    h = 4 * embed_dim
    k1, k2, k3, k4 = jax.random.split(key, 4)
    bound1 = 1.0 / (embed_dim ** 0.5)
    bound2 = 1.0 / (h ** 0.5)
    w1 = jax.random.uniform(k1, (embed_dim, h), jnp.float32, -bound1, bound1)
    b1 = jax.random.uniform(k2, (h,), jnp.float32, -bound1, bound1)
    w2 = jax.random.uniform(k3, (h, embed_dim), jnp.float32, -bound2, bound2)
    b2 = jax.random.uniform(k4, (embed_dim,), jnp.float32, -bound2, bound2)
    return w1, b1, w2, b2


if __name__ == "__main__":
    key = jax.random.PRNGKey(0)
    k_params, k_x = jax.random.split(key)

    B, T, E = 2, 8, EMBED_DIM
    w1, b1, w2, b2 = init_params(k_params, E)
    x = jax.random.normal(k_x, (B, T, E), jnp.float32)

    # Training mode (dropout active).
    out_train = jax.block_until_ready(
        feed_forward(x, w1, b1, w2, b2, seed=0, training=True))
    assert out_train.shape == (B, T, E), out_train.shape
    assert out_train.dtype == jnp.float32

    # Eval mode check against a pure-JAX reference.
    out_eval = jax.block_until_ready(
        feed_forward(x, w1, b1, w2, b2, seed=0, training=False))
    ref = (jnp.maximum(x.reshape(-1, E) @ w1 + b1, 0.0) @ w2 + b2).reshape(B, T, E)
    assert jnp.allclose(out_eval, ref, atol=1e-5, rtol=1e-5)

    # Dropout semantics: every training-mode element is either 0 or ref/(1-p).
    scaled = ref * (1.0 / (1.0 - DROPOUT_P))
    ok = jnp.isclose(out_train, 0.0, atol=1e-6) | jnp.isclose(
        out_train, scaled, atol=1e-5, rtol=1e-5)
    assert bool(jnp.all(ok))

    print("KERNEL_OK")
</pallas_src>

<mosaic_0001>
module attributes {stable_mosaic.version = 11 : i64} {
  func.func @_ffn_kernel(%arg0: i32, %arg1: memref<1xi32, #tpu.memory_space<smem>>, %arg2: memref<8x30xf32, #tpu.memory_space<vmem>>, %arg3: memref<30x128xf32, #tpu.memory_space<vmem>>, %arg4: memref<1x128xf32, #tpu.memory_space<vmem>>, %arg5: memref<128x30xf32, #tpu.memory_space<vmem>>, %arg6: memref<1x30xf32, #tpu.memory_space<vmem>>, %arg7: memref<8x30xf32, #tpu.memory_space<vmem>>) attributes {dimension_semantics = [#tpu.dimension_semantics<parallel>], iteration_bounds = array<i64: 2>, scalar_prefetch = 1 : i64, scratch_operands = 0 : i64, tpu.core_type = #tpu.core_type<tc>, window_params = [{transform_indices = @transform_0, window_bounds = array<i64: 8, 30>}, {pipeline_mode = #tpu.pipeline_mode<synchronous>, transform_indices = @transform_1, window_bounds = array<i64: 30, 128>}, {pipeline_mode = #tpu.pipeline_mode<synchronous>, transform_indices = @transform_2, window_bounds = array<i64: 1, 128>}, {pipeline_mode = #tpu.pipeline_mode<synchronous>, transform_indices = @transform_3, window_bounds = array<i64: 128, 30>}, {pipeline_mode = #tpu.pipeline_mode<synchronous>, transform_indices = @transform_4, window_bounds = array<i64: 1, 30>}, {transform_indices = @transform_5, window_bounds = array<i64: 8, 30>}]} {
    %c0 = arith.constant 0 : index
    %c0_0 = arith.constant 0 : index
    %0 = vector.load %arg2[%c0, %c0_0] : memref<8x30xf32, #tpu.memory_space<vmem>>, vector<8x30xf32>
    %c0_1 = arith.constant 0 : index
    %c0_2 = arith.constant 0 : index
    %1 = vector.load %arg3[%c0_1, %c0_2] : memref<30x128xf32, #tpu.memory_space<vmem>>, vector<30x128xf32>
    %cst = arith.constant dense<0.000000e+00> : vector<8x128xf32>
    %2 = tpu.matmul %0, %1, %cst {dimension_numbers = #tpu.dot_dimension_numbers<[1], [0], [0], [1], [0, 0, 1, 1], [], []>} : vector<8x30xf32>, vector<30x128xf32>, vector<8x128xf32> -> vector<8x128xf32>
    %c0_3 = arith.constant 0 : index
    %c0_4 = arith.constant 0 : index
    %3 = vector.load %arg4[%c0_3, %c0_4] : memref<1x128xf32, #tpu.memory_space<vmem>>, vector<1x128xf32>
    %4 = vector.broadcast %3 : vector<1x128xf32> to vector<8x128xf32>
    %5 = arith.addf %2, %4 : vector<8x128xf32>
    %cst_5 = arith.constant 0.000000e+00 : f32
    %6 = vector.broadcast %cst_5 : f32 to vector<8x128xf32>
    %7 = arith.maximumf %5, %6 : vector<8x128xf32>
    %c0_6 = arith.constant 0 : index
    %c0_7 = arith.constant 0 : index
    %8 = vector.load %arg5[%c0_6, %c0_7] : memref<128x30xf32, #tpu.memory_space<vmem>>, vector<128x30xf32>
    %cst_8 = arith.constant dense<0.000000e+00> : vector<8x30xf32>
    %9 = tpu.matmul %7, %8, %cst_8 {dimension_numbers = #tpu.dot_dimension_numbers<[1], [0], [0], [1], [0, 0, 1, 1], [], []>} : vector<8x128xf32>, vector<128x30xf32>, vector<8x30xf32> -> vector<8x30xf32>
    %c0_9 = arith.constant 0 : index
    %c0_10 = arith.constant 0 : index
    %10 = vector.load %arg6[%c0_9, %c0_10] : memref<1x30xf32, #tpu.memory_space<vmem>>, vector<1x30xf32>
    %11 = vector.broadcast %10 : vector<1x30xf32> to vector<8x30xf32>
    %12 = arith.addf %9, %11 : vector<8x30xf32>
    %c8_i32 = arith.constant 8 : i32
    %13 = arith.muli %arg0, %c8_i32 : i32
    %14 = tpu.iota {dimensions = array<i32: 0>} : vector<8x30xi32>
    %15 = vector.broadcast %13 : i32 to vector<8x30xi32>
    %16 = arith.addi %14, %15 : vector<8x30xi32>
    %17 = tpu.iota {dimensions = array<i32: 1>} : vector<8x30xi32>
    %c0_11 = arith.constant 0 : index
    %18 = memref.load %arg1[%c0_11] : memref<1xi32, #tpu.memory_space<smem>>
    %c-1640531535_i32 = arith.constant -1640531535 : i32
    %19 = vector.broadcast %c-1640531535_i32 : i32 to vector<8x30xi32>
    %20 = arith.muli %16, %19 : vector<8x30xi32>
    %c-2048144777_i32 = arith.constant -2048144777 : i32
    %21 = vector.broadcast %c-2048144777_i32 : i32 to vector<8x30xi32>
    %22 = arith.muli %17, %21 : vector<8x30xi32>
    %23 = arith.xori %20, %22 : vector<8x30xi32>
    %c1_i32 = arith.constant 1 : i32
    %24 = arith.addi %18, %c1_i32 : i32
    %c-1028477379_i32 = arith.constant -1028477379 : i32
    %25 = arith.muli %24, %c-1028477379_i32 : i32
    %26 = vector.broadcast %25 : i32 to vector<8x30xi32>
    %27 = arith.xori %23, %26 : vector<8x30xi32>
    %c16_i32 = arith.constant 16 : i32
    %28 = vector.broadcast %c16_i32 : i32 to vector<8x30xi32>
    %29 = arith.shrui %27, %28 : vector<8x30xi32>
    %30 = arith.xori %27, %29 : vector<8x30xi32>
    %c-2048144789_i32 = arith.constant -2048144789 : i32
    %31 = vector.broadcast %c-2048144789_i32 : i32 to vector<8x30xi32>
    %32 = arith.muli %30, %31 : vector<8x30xi32>
    %c13_i32 = arith.constant 13 : i32
    %33 = vector.broadcast %c13_i32 : i32 to vector<8x30xi32>
    %34 = arith.shrui %32, %33 : vector<8x30xi32>
    %35 = arith.xori %32, %34 : vector<8x30xi32>
    %c-1028477387_i32 = arith.constant -1028477387 : i32
    %36 = vector.broadcast %c-1028477387_i32 : i32 to vector<8x30xi32>
    %37 = arith.muli %35, %36 : vector<8x30xi32>
    %c16_i32_12 = arith.constant 16 : i32
    %38 = vector.broadcast %c16_i32_12 : i32 to vector<8x30xi32>
    %39 = arith.shrui %37, %38 : vector<8x30xi32>
    %40 = arith.xori %37, %39 : vector<8x30xi32>
    %c858993459_i32 = arith.constant 858993459 : i32
    %41 = vector.broadcast %c858993459_i32 : i32 to vector<8x30xi32>
    %42 = arith.cmpi uge, %40, %41 : vector<8x30xi32>
    %cst_13 = arith.constant 0.000000e+00 : f32
    %43 = vector.broadcast %cst_13 : f32 to vector<8x30xf32>
    %44 = arith.select %42, %12, %43 : vector<8x30xi1>, vector<8x30xf32>
    %c0_14 = arith.constant 0 : index
    %c0_15 = arith.constant 0 : index
    %45 = vector.load %arg7[%c0_14, %c0_15] : memref<8x30xf32, #tpu.memory_space<vmem>>, vector<8x30xf32>
    tpu.vector_store %arg7[%c0_14, %c0_15], %44 {strides = array<i32>} : memref<8x30xf32, #tpu.memory_space<vmem>>, vector<8x30xf32>,
    return
  }
  func.func @transform_0(%arg0: i32, %arg1: memref<1xi32, #tpu.memory_space<smem>>) -> (i32, i32) {
    %c0_i32 = arith.constant 0 : i32
    %c0_i32_0 = arith.constant 0 : i32
    return %arg0, %c0_i32 : i32, i32
  }
  func.func @transform_1(%arg0: i32, %arg1: memref<1xi32, #tpu.memory_space<smem>>) -> (i32, i32) {
    %c0_i32 = arith.constant 0 : i32
    %c0_i32_0 = arith.constant 0 : i32
    %c0_i32_1 = arith.constant 0 : i32
    return %c0_i32, %c0_i32_0 : i32, i32
  }
  func.func @transform_2(%arg0: i32, %arg1: memref<1xi32, #tpu.memory_space<smem>>) -> (i32, i32) {
    %c0_i32 = arith.constant 0 : i32
    %c0_i32_0 = arith.constant 0 : i32
    %c0_i32_1 = arith.constant 0 : i32
    return %c0_i32, %c0_i32_0 : i32, i32
  }
  func.func @transform_3(%arg0: i32, %arg1: memref<1xi32, #tpu.memory_space<smem>>) -> (i32, i32) {
    %c0_i32 = arith.constant 0 : i32
    %c0_i32_0 = arith.constant 0 : i32
    %c0_i32_1 = arith.constant 0 : i32
    return %c0_i32, %c0_i32_0 : i32, i32
  }
  func.func @transform_4(%arg0: i32, %arg1: memref<1xi32, #tpu.memory_space<smem>>) -> (i32, i32) {
    %c0_i32 = arith.constant 0 : i32
    %c0_i32_0 = arith.constant 0 : i32
    %c0_i32_1 = arith.constant 0 : i32
    return %c0_i32, %c0_i32_0 : i32, i32
  }
  func.func @transform_5(%arg0: i32, %arg1: memref<1xi32, #tpu.memory_space<smem>>) -> (i32, i32) {
    %c0_i32 = arith.constant 0 : i32
    %c0_i32_0 = arith.constant 0 : i32
    return %arg0, %c0_i32 : i32, i32
  }
}

</mosaic_0001>

<bundles_post_ra>
// kernel: tpu_custom_call.1
= control target key start
LH: loop header
LB: loop body
LE: loop exit
PB: predicated region body
PF: predicated region fallthrough
CT: control target
= control target key end

     0   :  { %s713_s0 = inlined_call_operand.<no memory space> [shape: s32[1], index: 0, kind: input, shape index: {}]   ;;  %s714_s1 = inlined_call_operand.vmem [shape: f32[16,30], index: 1, kind: input, shape index: {}]   ;;  %s715_s2 = inlined_call_operand.vmem [shape: f32[30,128], index: 2, kind: input, shape index: {}]   ;;  %s716_s3 = inlined_call_operand.vmem [shape: f32[1,128], index: 3, kind: input, shape index: {}]   ;;  %s717_s4 = inlined_call_operand.vmem [shape: f32[128,30], index: 4, kind: input, shape index: {}]   ;;  %s718_s5 = inlined_call_operand.vmem [shape: f32[1,30], index: 5, kind: input, shape index: {}]   ;;  %s719_s6 = inlined_call_operand.hbm [shape: f32[16,30], index: 6, kind: output, shape index: {}]  }
   0x1   :  { %11 = sst [smem:[#allocation3]] %s713_s0 }
   0x2   :  { %12 = vsyncpa [#allocation5], 0 }
   0x3   :  { %14 = vsyncpa [#allocation5 + $0x1], 0  ;;  %s560_s23 = smov 0   ;;  %s562_s24 = smov 0  }
   0x4   :  { %s564_s25 = smov 0   ;;  %s566_s26 = smov 0  }
   0x5 LB: > { %s581_s0 = sadd.s32 4294967295, %s520_s26   ;;  %s403_s27 = sadd.s32 4294967294, %s520_s26   ;;  %s520_s26 = sphi %s566_s26, %s725_s26   ;;  %s516_s25 = sphi %s564_s25, %s724_s25   ;;  %s512_s24 = sphi %s562_s24, %s723_s24   ;;  %s508_s23 = sphi %s560_s23, %s722_s23  }
   0x6   : > { %s585_s28 = sadd.s32 1, %s520_s26   ;;  %s137_s29 = sadd.s32 1, %s516_s25 }
   0x7   : > { %s134_s30 = ssub.s32 %s520_s26, %s585_s28  ;;  %p147_p0 = scmp.ne.s32.totalorder %s516_s25, %s512_s24 }
   0x8   : > { %p135_p1 = scmp.eq.s32.totalorder %s134_s30, 0  ;;  %p148_p2 = scmp.eq.s32.totalorder %s581_s0, 1 }
   0x9   : > { %p153_p3 = scmp.ne.s32.totalorder %s512_s24, %s508_s23  ;;  %p154_p4 = scmp.eq.s32.totalorder %s403_s27, 1 }
   0xa   : > { %s596_s7 = scalar_select %p135_p1, %s516_s25, %s137_s29  }
   0xb   : > { %p598_p5 = por %p148_p2, %p147_p0  ;;  %p602_p6 = por %p154_p4, %p153_p3 }
   0xc   : > { %p406_p7 = scmp.ge.s32.totalorder %s520_s26, 1  ;;  %p191_p8 = scmp.lt.s32.totalorder %s520_s26, 3 }
   0xe   : > { %p192_p9 = pnand %p406_p7, %p191_p8 }
   0xf   : > { %p218_p10 = scmp.lt.s32.totalorder (!%p192_p9), %s581_s0, 1  ;;  %s307_s10 = sld [smem:[#allocation3]] (!%p192_p9) }
  0x10   : > { %195 = sbr.rel (%p192_p9) target bundleno = 291 (0x123), region = 40 }
  0x15   : > { %v226_v0 = vld [vmem:[%s715_s2 + $0x18] sm:$0x3f]  ;;  %vm235_vm0 = vcmask 1045504   ;;  %v225_v1 = vld [vmem:[%s715_s2 + $0x10] sm:$0xff]  ;;  %v224_v4 = vld [vmem:[%s715_s2 + $0x8] sm:$0xff]  ;;  %s219_s20 = scalar_select %p218_p10, %s581_s0, 1  ;;  %v301_v25 = vlaneseq }
  0x16   : > { %409 = vmatpush.msk.msra.mxu0 %vm235_vm0, %v226_v0  ;;  %v275_v2 = vld [vmem:[%s717_s4 + $0x78] sm:$0xff]  ;;  %v274_v3 = vld [vmem:[%s717_s4 + $0x70] sm:$0xff]  ;;  %v273_v5 = vld [vmem:[%s717_s4 + $0x68] sm:$0xff]  ;;  %vm231_vm1 = vcmask 244736   ;;  %s311_s11 = sadd.s32 1, %s307_s10 }
  0x17   : > { %280 = vmatpush.msra.mxu1 %v275_v2  ;;  %v223_v6 = vld [vmem:[%s715_s2] sm:$0xff]  ;;  %s408_s30 = sshll.u32 %s219_s20, 3  ;;  %v271_v9 = vld [vmem:[%s717_s4 + $0x58] sm:$0xff]  ;;  %v270_v10 = vld [vmem:[%s717_s4 + $0x50] sm:$0xff]  ;;  %v302_v26 = vshrl.u32 %v301_v25, 7  ;;  %v306_v29 = vand.u32 127, %v301_v25 }
  0x18   : > { %252 = vmatpush.msra.mxu0 %v225_v1  ;;  %s221_s12 = scalar_lea.vmem %s714_s1, %s408_s30  ;;  %v272_v7 = vld [vmem:[%s717_s4 + $0x60] sm:$0xff]  ;;  %v269_v11 = vld [vmem:[%s717_s4 + $0x48] sm:$0xff]  ;;  %v267_v13 = vld [vmem:[%s717_s4 + $0x38] sm:$0xff]  ;;  %s411_s30 = sshll.u32 %s581_s0, 3 }
  0x19   : > { %281 = vmatpush.msra.mxu1 %v274_v3  ;;  %v222_v8 = vld [vmem:[%s221_s12] sm:$0xff]  ;;  %v266_v14 = vld [vmem:[%s717_s4 + $0x30] sm:$0xff]  ;;  %v265_v15 = vld [vmem:[%s717_s4 + $0x28] sm:$0xff]  ;;  %v303_v27 = vstv %s411_s30  ;;  %v309_v31 = vmul.u32 2246822519, %v306_v29  ;;  %s215_s0 = sand.u32 1, %s512_s24   ;;  %s339_s16 = scalar_lea.hbm %s719_s6, %s411_s30 }
  0x1a   : > { %253 = vmatpush.msra.mxu0 %v224_v4  ;;  %v268_v12 = vld [vmem:[%s717_s4 + $0x40] sm:$0xff]  ;;  %v263_v17 = vld [vmem:[%s717_s4 + $0x18] sm:$0xff]  ;;  %v262_v18 = vld [vmem:[%s717_s4 + $0x10] sm:$0xff]  ;;  %v304_v28 = vadd.s32 %v303_v27, %v302_v26  ;;  %s312_s12 = smul.u32 3266489917, %s311_s11  ;;  %s407_s13 = sshll.u32 %s215_s0, 3 }
  0x1b   : > { %282 = vmatpush.msra.mxu1 %v273_v5  ;;  %v264_v16 = vld [vmem:[%s717_s4 + $0x20] sm:$0xff]  ;;  %v261_v19 = vld [vmem:[%s717_s4 + $0x8] sm:$0xff]  ;;  %s217_s19 = scalar_lea.vmem [#allocation4], %s407_s13  ;;  %s343_s21 = sshll.u32 %s339_s16, 4  ;;  %s344_s21 = int_to_ptr.hbm [resolvable:$true] %s343_s21 }
  0x1c   : > { %254 = vmatpush.msra.mxu0 %v223_v6  ;;  %v260_v20 = vld [vmem:[%s717_s4] sm:$0xff]  ;;  %v308_v30 = vmul.u32 2654435761, %v304_v28  ;;  %v313_v33 = vstv %s312_s12  ;;  %s341_s20 = sshll.u32 %s217_s19, 4  ;;  %s329_s22 = scalar_lea.sflag [#allocation5], %s215_s0  ;;  %s342_s20 = int_to_ptr.vmem [resolvable:$true] %s341_s20 }
  0x1d   : > { %410 = vmatmul.msk.f32.vlgmr.msra.gmra.mxu0 %vm231_vm1, %v222_v8  ;;  %283 = vmatpush.msra.mxu1 %v272_v7  ;;  %v456_v21 = vld [vmem:[%s716_s3] ss:$0 sm:$0xff]  ;;  %s472_s27 = sshra.s32 %s344_s21, 4  ;;  %s478_s11 = scalar_lea.hbm %s719_s6, 16  ;;  %s473_s27 = int_to_ptr.hbm [resolvable:$true] %s472_s27 }
  0x1e   : > { %v310_v32 = vxor.u32 %v309_v31, %v308_v30  ;;  %v457_v44 = vld [vmem:[%s718_s5] ss:$0 sm:$0xff]  ;;  %s474_s29 = scalar_lea.hbm %s473_s27, 8  ;;  %p479_p0 = scmp.lt.s32.totalorder %s473_s27, %s719_s6 }
  0x1f   : > { %284 = vmatpush.msra.mxu1 %v271_v9  ;;  %p475_p11 = scmp.ne.s32.totalorder %s473_s27, %s474_s29  ;;  %p480_p1 = scmp.lt.s32.totalorder %s478_s11, %s474_s29 }
  0x20   : > { %v314_v34 = vxor.u32 %v313_v33, %v310_v32 }
  0x21   : > { %285 = vmatpush.msra.mxu1 %v270_v10  ;;  %p476_p12 = pnand %p475_p11, %p598_p5  ;;  %p481_p2 = por %p480_p1, %p479_p0 }
  0x22   : > { %v315_v35 = vshrl.u32 %v314_v34, 16 }
  0x23   : > { %286 = vmatpush.msra.mxu1 %v269_v11  ;;  %p477_p13 = pneg %p476_p12 }
  0x24   : > { %v316_v36 = vxor.u32 %v315_v35, %v314_v34 }
  0x25   : > { %287 = vmatpush.msra.mxu1 %v268_v12  ;;  %p482_p3 = pnand %p481_p2, %p477_p13 }
  0x26   : > { %v317_v37 = vmul.u32 2246822507, %v316_v36 }
  0x27   : > { %288 = vmatpush.msra.mxu1 %v267_v13 }
  0x28   : > { %v318_v38 = vshrl.u32 %v317_v37, 13 }
  0x29   : > { %289 = vmatpush.msra.mxu1 %v266_v14 }
  0x2a   : > { %v319_v39 = vxor.u32 %v318_v38, %v317_v37 }
  0x2b   : > { %290 = vmatpush.msra.mxu1 %v265_v15 }
  0x2c   : > { %v320_v40 = vmul.u32 3266489909, %v319_v39 }
  0x2d   : > { %291 = vmatpush.msra.mxu1 %v264_v16 }
  0x2e   : > { %v321_v41 = vshrl.u32 %v320_v40, 16 }
  0x2f   : > { %292 = vmatpush.msra.mxu1 %v263_v17 }
  0x30   : > { %v322_v42 = vxor.u32 %v321_v41, %v320_v40 }
  0x31   : > { %293 = vmatpush.msra.mxu1 %v262_v18 }
  0x32   : > { %v412_v43 = vxor.u32 2147483648, %v322_v42 }
  0x33   : > { %294 = vmatpush.msra.mxu1 %v261_v19 }
  0x34   : > { %vm325_vm2 = vcmp.ge.s32.totalorder %v412_v43, 3006477107 }
  0x35   : > { %295 = vmatpush.msra.mxu1 %v260_v20 }
  0x9a   : > { %v256_v22 = vpop.f32.mrf.mxu0 }
  0x9b   : > { %v257_v23 = vadd.f32 %v456_v21, %v256_v22 }
  0x9d   : > { %v259_v24 = vmax.f32 %v257_v23, 0.0 }
  0x9f   : > { %296 = vmatmul.f32.vlgmr.msra.gmra.mxu1 %v259_v24 }
 0x11c   : > { %v297_v45 = vpop.f32.mrf.mxu1 }
 0x11d   : > { %v298_v46 = vadd.f32 %v457_v44, %v297_v45 }
 0x11f   : > { %v326_v47 = vsel %vm325_vm2, %v298_v46, 0.0 }
 0x120   : > { %327 = vst.msk [vmem:[%s217_s19] sm:$0xff] %vm231_vm1, %v326_v47 }
 0x121   : > { %485 = shalt.err (!%p482_p3)
}
 0x122   : > { %417 = dma.vmem_to_hbm [thread:$0]  (%p598_p5), %s342_s20, 128, %s344_s21, %s329_s22  }
 0x123 PF: > { %p423_p4 = scmp.ge.s32.totalorder %s520_s26, 2  ;;  %s355_s0 = sand.u32 1, %s508_s23  }
 0x124   : > { %s356_s14 = scalar_lea.sflag [#allocation5], %s355_s0 }
 0x125   : > { %p420_p7 = pnand %p423_p4, %p602_p6 }
 0x127   : > { %p421_p8 = pneg %p420_p7 }
 0x129   : > { %503 = dma.done.wait (%p421_p8), %s356_s14, 128  }
 0x12a   : > { %505 = vsyncadd (%p421_p8), %s356_s14, 4294967168  ;;  %p17_p9 = scmp.ge.s32.totalorder %s585_s28, 4   ;;  %s722_s23 = smov %s512_s24 }
 0x12b   : > { %s723_s24 = smov %s516_s25  ;;  %s724_s25 = smov %s596_s7 }
 0x12c   : > { %s725_s26 = smov %s585_s28  ;;  %19 = sbr.rel (!%p17_p9) target bundleno = 5 (0x5), region = 75 }
 0x131   :  { %362 = vsyncpa [#allocation5], 1 }
 0x132   :  { %364 = vsyncpa [#allocation5 + $0x1], 1 }

</bundles_post_ra>
